<compile_context>
chip_gen: v7x
topology: tpu7x:2x2x1
jax: 0.10.0
libtpu: 0.0.40
codegen_flags: <defaults>
</compile_context>

<pallas_src>
import functools

import jax
import jax.numpy as jnp
from jax.experimental import pallas as pl
from jax.experimental.pallas import tpu as pltpu


def _round_up(x, m):
    return (x + m - 1) // m * m


def _feature_resizer_kernel(x_ref, w_ref, b_ref, g_ref, beta_ref, mask_ref, o_ref, *,
                            eps, do_ln, c2, c2_pad):
    # x_ref:    (TN, C1)      input token tile (native dtype, e.g. bf16/f32)
    # w_ref:    (C1, C2_pad)  fc weight, already transposed + lane-padded (zeros)
    # b_ref:    (1,  C2_pad)  fc bias   (f32, zero in padded lanes)
    # g_ref:    (1,  C2_pad)  LN gamma  (f32, zero in padded lanes)
    # beta_ref: (1,  C2_pad)  LN beta   (f32, zero in padded lanes)
    # mask_ref: (1,  C2_pad)  f32 {1,0} column mask (1 over the real C2 lanes)
    # o_ref:    (TN, C2_pad)  output tile

    # Native-dtype MXU matmul with f32 accumulation (no operand upcast).
    y = jnp.dot(x_ref[...], w_ref[...], preferred_element_type=jnp.float32)
    y = y + b_ref[...]

    if do_ln:
        inv_c2 = 1.0 / c2
        # Padded lanes of y are exactly 0 (weight/bias pads are zero), so a plain
        # sum over the padded width already equals the sum over the real C2 lanes.
        mean = jnp.sum(y, axis=-1, keepdims=True) * inv_c2
        yc = y - mean
        if c2_pad != c2:
            # Padded lanes of yc hold -mean; one VPU multiply with the
            # precomputed {1,0} row zeroes them before the variance (no per-tile
            # iota/compare/select). The output path needs no extra masking:
            # gamma/beta are zero in the padded lanes.
            yc = yc * mask_ref[...]
        var = jnp.sum(yc * yc, axis=-1, keepdims=True) * inv_c2
        inv = jax.lax.rsqrt(var + eps)
        y = yc * inv * g_ref[...] + beta_ref[...]

    o_ref[...] = y.astype(o_ref.dtype)


def prepare_feature_resizer_params(fc_w, fc_b, ln_g, ln_b, *, compute_dtype=None):
    """One-time parameter prep (hoist out of the per-call hot path).

    fc_w: (C2, C1) PyTorch nn.Linear layout; fc_b / ln_g / ln_b: (C2,).
    compute_dtype: dtype for the matmul weight; MUST match the activation dtype
        passed to feature_resizer_apply (use bf16 for full MXU rate).

    Invariant: every padded parameter lane is exactly zero — the kernel's mean
    and output-path math relies on it (do not pad gamma with ones).
    """
    C2, C1 = fc_w.shape
    C2p = _round_up(C2, 128)  # lane-dense output width (unmasked vst)
    if compute_dtype is None:
        compute_dtype = fc_w.dtype
    pad = C2p - C2
    w_t = jnp.pad(jnp.transpose(fc_w), ((0, 0), (0, pad))).astype(compute_dtype)  # (C1, C2p)
    b = jnp.pad(fc_b.astype(jnp.float32), (0, pad)).reshape(1, C2p)
    g = jnp.pad(ln_g.astype(jnp.float32), (0, pad)).reshape(1, C2p)
    beta = jnp.pad(ln_b.astype(jnp.float32), (0, pad)).reshape(1, C2p)
    mask = jnp.pad(jnp.ones((C2,), jnp.float32), (0, pad)).reshape(1, C2p)
    return dict(w_t=w_t, b=b, g=g, beta=beta, mask=mask, c1=C1, c2=C2, c2_pad=C2p)


def _generation_profile():
    """Best-effort per-generation tiling knobs.

    Returns (xout_budget_bytes, vmem_limit_clamp, max_tile_rows, row_granularity,
    want_multi_step_grid). Defaults are v7x-conservative (64 MiB VMEM per TC,
    2 TensorCores); detection failures just fall back to those.
    """
    kind = ""
    try:
        kind = jax.devices()[0].device_kind.lower()
    except Exception:
        pass
    vmem_bytes = None
    try:
        vmem_bytes = int(pltpu.get_tpu_info().vmem_capacity_bytes)
    except Exception:
        pass

    is_v5 = "v5" in kind
    is_v6 = "v6" in kind
    big_vmem = vmem_bytes is not None and vmem_bytes >= (96 << 20)
    if is_v5 or is_v6 or (big_vmem and "v7" not in kind):
        # 128 MiB parts (v5e / v6e): single TensorCore, plenty of VMEM.
        budget = 56 << 20
        clamp = 96 << 20
        max_tile = 2048
        gran = 128 if is_v5 else 256   # v5e MXU is 4x128x128 -> 128-row tiles OK
        multi_step = False
    else:
        # v7x (or unknown): 64 MiB VMEM/TC, 2 TCs -> want >=2 (ideally 4) steps.
        budget = 24 << 20
        clamp = 48 << 20
        max_tile = 1024
        gran = 256
        multi_step = True
    return budget, clamp, max_tile, gran, multi_step


def _default_tile_n(N, C1, C2p, x_itemsize, out_itemsize, *, budget, max_tile,
                    gran, multi_step):
    # Per-row VMEM: double-buffered x/out tiles plus ~2 f32 LN intermediates
    # (y, yc) of full tile width that Mosaic keeps live in VMEM.
    per_row = 2 * (C1 * x_itemsize + C2p * out_itemsize) + 2 * C2p * 4
    t = budget // max(per_row, 1)
    t = (t // gran) * gran
    t = min(max(int(t), gran), max_tile)
    if multi_step and N > gran:
        # v7x: keep the grid at >=2 (ideally 4) steps so the "parallel" axis
        # actually shards across both TensorCores.
        t = max(gran, min(t, _round_up(-(-N // 4), gran)))
    if N <= t:
        # Tiny problem: one sublane-aligned tile covering everything.
        return _round_up(max(N, 16), 16)
    return t


def _const_block_spec(shape, single_buffer):
    """BlockSpec for operands whose block index is (0, 0) at every grid step."""
    index_map = lambda i: (0, 0)
    if single_buffer:
        # Fetched once; no second pipeline buffer needed -> halves resident
        # weight VMEM.
        return pl.BlockSpec(shape, index_map, pipeline_mode=pl.Buffered(1))
    return pl.BlockSpec(shape, index_map)


def _build_call(kernel, out_dtype, N, C1, c2p, tile_n, vmem_limit, single_buffer):
    grid = (pl.cdiv(N, tile_n),)
    return pl.pallas_call(
        kernel,
        out_shape=jax.ShapeDtypeStruct((N, c2p), out_dtype),
        grid_spec=pltpu.PrefetchScalarGridSpec(
            num_scalar_prefetch=0,
            grid=grid,
            in_specs=[
                pl.BlockSpec((tile_n, C1), lambda i: (i, 0)),      # x tile (pipelined)
                _const_block_spec((C1, c2p), single_buffer),       # weight (resident)
                _const_block_spec((1, c2p), single_buffer),        # bias
                _const_block_spec((1, c2p), single_buffer),        # ln gamma
                _const_block_spec((1, c2p), single_buffer),        # ln beta
                _const_block_spec((1, c2p), single_buffer),        # column mask
            ],
            out_specs=pl.BlockSpec((tile_n, c2p), lambda i: (i, 0)),
        ),
        compiler_params=pltpu.CompilerParams(
            dimension_semantics=("parallel",),
            vmem_limit_bytes=vmem_limit,
        ),
    )


def feature_resizer_apply(encoder_features, params, *, eps=1e-12, do_ln=True,
                          tile_n=None, unpad_output=True):
    """encoder_features: (B, S, C1); params from prepare_feature_resizer_params.

    Returns (B, S, C2), or (B, S, C2_pad) with exact-zero padded lanes when
    unpad_output=False (lets a downstream consumer skip the eager column slice).
    """
    B, S, C1 = encoder_features.shape
    if C1 != params["c1"]:
        raise ValueError(f"feature dim mismatch: x has C1={C1}, params expect {params['c1']}")
    c2, c2p = params["c2"], params["c2_pad"]
    N = B * S

    x2d = encoder_features.reshape(N, C1)
    w_t = params["w_t"]
    if w_t.dtype != x2d.dtype:
        # A silent cast would be a per-call full-weight HBM pass (and quietly
        # change numerics); make the mismatch explicit instead.
        raise ValueError(
            f"weight dtype {w_t.dtype} != activation dtype {x2d.dtype}; re-run "
            "prepare_feature_resizer_params(compute_dtype=<activation dtype>)")

    x_bytes = jnp.dtype(x2d.dtype).itemsize
    out_bytes = x_bytes  # output keeps the activation dtype
    budget, clamp, max_tile, gran, multi_step = _generation_profile()
    if tile_n is None:
        tile_n = _default_tile_n(N, C1, c2p, x_bytes, out_bytes, budget=budget,
                                 max_tile=max_tile, gran=gran, multi_step=multi_step)
    else:
        tile_n = max(16, _round_up(int(tile_n), 16))
    tile_n = min(tile_n, _round_up(N, 16))  # never larger than the (aligned) problem

    # Explicit VMEM budget: single-buffered weight + double-buffered x/out tiles
    # + f32 LN intermediates + param rows + slack.
    w_bytes = jnp.dtype(w_t.dtype).itemsize
    needed = (C1 * c2p * w_bytes
              + 2 * tile_n * (C1 * x_bytes + c2p * out_bytes)
              + 2 * tile_n * c2p * 4
              + 8 * c2p * 4
              + (2 << 20))
    vmem_limit = int(min(clamp, max(32 << 20, needed)))

    kernel = functools.partial(_feature_resizer_kernel, eps=eps, do_ln=do_ln,
                               c2=c2, c2_pad=c2p)
    args = (x2d, w_t, params["b"], params["g"], params["beta"], params["mask"])

    # No row padding / slicing: grid = cdiv(N, tile_n); Pallas masks the partial
    # last block (OOB reads padded, OOB writes dropped; rows are independent).
    try:
        out2d = _build_call(kernel, encoder_features.dtype, N, C1, c2p, tile_n,
                            vmem_limit, single_buffer=True)(*args)
    except Exception:
        # TODO(synk): fallback for jax/libtpu combos that reject
        # pipeline_mode=pl.Buffered(1); costs only one extra resident weight buffer.
        out2d = _build_call(kernel, encoder_features.dtype, N, C1, c2p, tile_n,
                            vmem_limit, single_buffer=False)(*args)

    if unpad_output and c2p != c2:
        out2d = out2d[:, :c2]  # fuses into the consumer under jit
    return out2d.reshape(B, S, out2d.shape[-1])


def feature_resizer(encoder_features, fc_w, fc_b, ln_g, ln_b, *, eps=1e-12,
                    do_ln=True, tile_n=None):
    """Convenience one-shot entry point (prefer preparing params once)."""
    params = prepare_feature_resizer_params(
        fc_w, fc_b, ln_g, ln_b, compute_dtype=encoder_features.dtype)
    return feature_resizer_apply(encoder_features, params, eps=eps, do_ln=do_ln,
                                 tile_n=tile_n)


def feature_resizer_ref(x, fc_w, fc_b, ln_g, ln_b, *, eps=1e-12, do_ln=True):
    y = jnp.einsum("bsc,oc->bso", x.astype(jnp.float32),
                   fc_w.astype(jnp.float32)) + fc_b.astype(jnp.float32)
    if do_ln:
        mean = jnp.mean(y, axis=-1, keepdims=True)
        var = jnp.mean((y - mean) ** 2, axis=-1, keepdims=True)
        y = (y - mean) * jax.lax.rsqrt(var + eps) * ln_g.astype(jnp.float32) \
            + ln_b.astype(jnp.float32)
    return y.astype(x.dtype)


if __name__ == "__main__":
    B, S = 2, 8
    C1, C2 = 32, 64  # input_feat_size, output_feat_size

    key = jax.random.PRNGKey(0)
    k_x, k_w, k_b, k_g, k_beta, k_x2 = jax.random.split(key, 6)

    encoder_features = jax.random.normal(k_x, (B, S, C1), dtype=jnp.float32)
    fc_w = jax.random.normal(k_w, (C2, C1), dtype=jnp.float32) * (1.0 / jnp.sqrt(C1))
    fc_b = jax.random.normal(k_b, (C2,), dtype=jnp.float32) * 0.01
    ln_g = 1.0 + 0.05 * jax.random.normal(k_g, (C2,), dtype=jnp.float32)
    ln_b = 0.05 * jax.random.normal(k_beta, (C2,), dtype=jnp.float32)

    # --- f32 check (params prepared once, hoisted out of the call path) ---
    params_f32 = prepare_feature_resizer_params(fc_w, fc_b, ln_g, ln_b,
                                                compute_dtype=jnp.float32)
    out = jax.block_until_ready(feature_resizer_apply(encoder_features, params_f32))
    ref = feature_resizer_ref(encoder_features, fc_w, fc_b, ln_g, ln_b)
    assert out.shape == (B, S, C2)
    assert jnp.allclose(out, ref, atol=1e-5, rtol=1e-5), "f32 mismatch vs reference"

    # --- no-LN path (Linear + identity dropout only) ---
    out_noln = jax.block_until_ready(
        feature_resizer_apply(encoder_features, params_f32, do_ln=False))
    ref_noln = feature_resizer_ref(encoder_features, fc_w, fc_b, ln_g, ln_b,
                                   do_ln=False)
    assert jnp.allclose(out_noln, ref_noln, atol=1e-5, rtol=1e-5), "no-LN mismatch"

    # --- bf16 activations/weight (native-dtype MXU matmul, f32 accumulation) ---
    x_bf16 = encoder_features.astype(jnp.bfloat16)
    params_bf16 = prepare_feature_resizer_params(fc_w, fc_b, ln_g, ln_b,
                                                 compute_dtype=jnp.bfloat16)
    out_bf16 = jax.block_until_ready(feature_resizer_apply(x_bf16, params_bf16))
    ref_bf16 = feature_resizer_ref(x_bf16, fc_w.astype(jnp.bfloat16),
                                   fc_b, ln_g, ln_b)
    assert jnp.allclose(out_bf16.astype(jnp.float32), ref_bf16.astype(jnp.float32),
                        atol=2e-2, rtol=2e-2), "bf16 mismatch vs reference"

    # --- multi-step grid with a partial last block (no row padding/slicing) ---
    B2, S2 = 2, 100  # N = 200, tile_n=64 -> grid=(4,), last block masked by Pallas
    x2 = jax.random.normal(k_x2, (B2, S2, C1), dtype=jnp.float32)
    out2 = jax.block_until_ready(
        feature_resizer_apply(x2, params_f32, tile_n=64))
    ref2 = feature_resizer_ref(x2, fc_w, fc_b, ln_g, ln_b)
    assert out2.shape == (B2, S2, C2)
    assert jnp.allclose(out2, ref2, atol=1e-5, rtol=1e-5), "tiled mismatch vs reference"

    print("KERNEL_OK")
</pallas_src>

<mosaic_0001>
module attributes {stable_mosaic.version = 11 : i64} {
  func.func @_feature_resizer_kernel(%arg0: i32, %arg1: memref<16x32xf32, #tpu.memory_space<vmem>>, %arg2: memref<32x128xf32, #tpu.memory_space<vmem>>, %arg3: memref<1x128xf32, #tpu.memory_space<vmem>>, %arg4: memref<1x128xf32, #tpu.memory_space<vmem>>, %arg5: memref<1x128xf32, #tpu.memory_space<vmem>>, %arg6: memref<1x128xf32, #tpu.memory_space<vmem>>, %arg7: memref<16x128xf32, #tpu.memory_space<vmem>>) attributes {dimension_semantics = [#tpu.dimension_semantics<parallel>], iteration_bounds = array<i64: 1>, scalar_prefetch = 0 : i64, scratch_operands = 0 : i64, tpu.core_type = #tpu.core_type<tc>, window_params = [{transform_indices = @transform_0, window_bounds = array<i64: 16, 32>}, {pipeline_mode = #tpu.pipeline_mode<synchronous>, transform_indices = @transform_1, window_bounds = array<i64: 32, 128>}, {pipeline_mode = #tpu.pipeline_mode<synchronous>, transform_indices = @transform_2, window_bounds = array<i64: 1, 128>}, {pipeline_mode = #tpu.pipeline_mode<synchronous>, transform_indices = @transform_3, window_bounds = array<i64: 1, 128>}, {pipeline_mode = #tpu.pipeline_mode<synchronous>, transform_indices = @transform_4, window_bounds = array<i64: 1, 128>}, {pipeline_mode = #tpu.pipeline_mode<synchronous>, transform_indices = @transform_5, window_bounds = array<i64: 1, 128>}, {transform_indices = @transform_6, window_bounds = array<i64: 16, 128>}]} {
    %c0 = arith.constant 0 : index
    %c0_0 = arith.constant 0 : index
    %0 = vector.load %arg1[%c0, %c0_0] : memref<16x32xf32, #tpu.memory_space<vmem>>, vector<16x32xf32>
    %c0_1 = arith.constant 0 : index
    %c0_2 = arith.constant 0 : index
    %1 = vector.load %arg2[%c0_1, %c0_2] : memref<32x128xf32, #tpu.memory_space<vmem>>, vector<32x128xf32>
    %cst = arith.constant dense<0.000000e+00> : vector<16x128xf32>
    %2 = tpu.matmul %0, %1, %cst {dimension_numbers = #tpu.dot_dimension_numbers<[1], [0], [0], [1], [0, 0, 1, 1], [], []>} : vector<16x32xf32>, vector<32x128xf32>, vector<16x128xf32> -> vector<16x128xf32>
    %c0_3 = arith.constant 0 : index
    %c0_4 = arith.constant 0 : index
    %3 = vector.load %arg3[%c0_3, %c0_4] : memref<1x128xf32, #tpu.memory_space<vmem>>, vector<1x128xf32>
    %4 = vector.broadcast %3 : vector<1x128xf32> to vector<16x128xf32>
    %5 = arith.addf %2, %4 : vector<16x128xf32>
    %cst_5 = arith.constant dense<0.000000e+00> : vector<16xf32>
    %6 = vector.multi_reduction <add>, %5, %cst_5 [1] : vector<16x128xf32> to vector<16xf32>
    %7 = vector.shape_cast %6 : vector<16xf32> to vector<16x1xf32>
    %cst_6 = arith.constant 1.562500e-02 : f32
    %8 = vector.broadcast %cst_6 : f32 to vector<16x1xf32>
    %9 = arith.mulf %7, %8 : vector<16x1xf32>
    %10 = vector.broadcast %9 : vector<16x1xf32> to vector<16x128xf32>
    %11 = arith.subf %5, %10 : vector<16x128xf32>
    %c0_7 = arith.constant 0 : index
    %c0_8 = arith.constant 0 : index
    %12 = vector.load %arg6[%c0_7, %c0_8] : memref<1x128xf32, #tpu.memory_space<vmem>>, vector<1x128xf32>
    %13 = vector.broadcast %12 : vector<1x128xf32> to vector<16x128xf32>
    %14 = arith.mulf %11, %13 : vector<16x128xf32>
    %15 = arith.mulf %14, %14 : vector<16x128xf32>
    %cst_9 = arith.constant dense<0.000000e+00> : vector<16xf32>
    %16 = vector.multi_reduction <add>, %15, %cst_9 [1] : vector<16x128xf32> to vector<16xf32>
    %17 = vector.shape_cast %16 : vector<16xf32> to vector<16x1xf32>
    %cst_10 = arith.constant 1.562500e-02 : f32
    %18 = vector.broadcast %cst_10 : f32 to vector<16x1xf32>
    %19 = arith.mulf %17, %18 : vector<16x1xf32>
    %cst_11 = arith.constant 9.99999996E-13 : f32
    %20 = vector.broadcast %cst_11 : f32 to vector<16x1xf32>
    %21 = arith.addf %19, %20 : vector<16x1xf32>
    %22 = math.rsqrt %21 : vector<16x1xf32>
    %23 = vector.broadcast %22 : vector<16x1xf32> to vector<16x128xf32>
    %24 = arith.mulf %14, %23 : vector<16x128xf32>
    %c0_12 = arith.constant 0 : index
    %c0_13 = arith.constant 0 : index
    %25 = vector.load %arg4[%c0_12, %c0_13] : memref<1x128xf32, #tpu.memory_space<vmem>>, vector<1x128xf32>
    %26 = vector.broadcast %25 : vector<1x128xf32> to vector<16x128xf32>
    %27 = arith.mulf %24, %26 : vector<16x128xf32>
    %c0_14 = arith.constant 0 : index
    %c0_15 = arith.constant 0 : index
    %28 = vector.load %arg5[%c0_14, %c0_15] : memref<1x128xf32, #tpu.memory_space<vmem>>, vector<1x128xf32>
    %29 = vector.broadcast %28 : vector<1x128xf32> to vector<16x128xf32>
    %30 = arith.addf %27, %29 : vector<16x128xf32>
    %c0_16 = arith.constant 0 : index
    %c0_17 = arith.constant 0 : index
    %31 = vector.load %arg7[%c0_16, %c0_17] : memref<16x128xf32, #tpu.memory_space<vmem>>, vector<16x128xf32>
    tpu.vector_store %arg7[%c0_16, %c0_17], %30 {strides = array<i32>} : memref<16x128xf32, #tpu.memory_space<vmem>>, vector<16x128xf32>,
    return
  }
  func.func @transform_0(%arg0: i32) -> (i32, i32) {
    %c0_i32 = arith.constant 0 : i32
    %c0_i32_0 = arith.constant 0 : i32
    return %arg0, %c0_i32 : i32, i32
  }
  func.func @transform_1(%arg0: i32) -> (i32, i32) {
    %c0_i32 = arith.constant 0 : i32
    %c0_i32_0 = arith.constant 0 : i32
    %c0_i32_1 = arith.constant 0 : i32
    return %c0_i32, %c0_i32_0 : i32, i32
  }
  func.func @transform_2(%arg0: i32) -> (i32, i32) {
    %c0_i32 = arith.constant 0 : i32
    %c0_i32_0 = arith.constant 0 : i32
    %c0_i32_1 = arith.constant 0 : i32
    return %c0_i32, %c0_i32_0 : i32, i32
  }
  func.func @transform_3(%arg0: i32) -> (i32, i32) {
    %c0_i32 = arith.constant 0 : i32
    %c0_i32_0 = arith.constant 0 : i32
    %c0_i32_1 = arith.constant 0 : i32
    return %c0_i32, %c0_i32_0 : i32, i32
  }
  func.func @transform_4(%arg0: i32) -> (i32, i32) {
    %c0_i32 = arith.constant 0 : i32
    %c0_i32_0 = arith.constant 0 : i32
    %c0_i32_1 = arith.constant 0 : i32
    return %c0_i32, %c0_i32_0 : i32, i32
  }
  func.func @transform_5(%arg0: i32) -> (i32, i32) {
    %c0_i32 = arith.constant 0 : i32
    %c0_i32_0 = arith.constant 0 : i32
    %c0_i32_1 = arith.constant 0 : i32
    return %c0_i32, %c0_i32_0 : i32, i32
  }
  func.func @transform_6(%arg0: i32) -> (i32, i32) {
    %c0_i32 = arith.constant 0 : i32
    %c0_i32_0 = arith.constant 0 : i32
    return %arg0, %c0_i32 : i32, i32
  }
}

module attributes {stable_mosaic.version = 11 : i64} {
  func.func @_feature_resizer_kernel(%arg0: i32, %arg1: memref<16x32xf32, #tpu.memory_space<vmem>>, %arg2: memref<32x128xf32, #tpu.memory_space<vmem>>, %arg3: memref<1x128xf32, #tpu.memory_space<vmem>>, %arg4: memref<1x128xf32, #tpu.memory_space<vmem>>, %arg5: memref<1x128xf32, #tpu.memory_space<vmem>>, %arg6: memref<1x128xf32, #tpu.memory_space<vmem>>, %arg7: memref<16x128xf32, #tpu.memory_space<vmem>>) attributes {dimension_semantics = [#tpu.dimension_semantics<parallel>], iteration_bounds = array<i64: 1>, scalar_prefetch = 0 : i64, scratch_operands = 0 : i64, tpu.core_type = #tpu.core_type<tc>, window_params = [{transform_indices = @transform_0, window_bounds = array<i64: 16, 32>}, {pipeline_mode = #tpu.pipeline_mode<synchronous>, transform_indices = @transform_1, window_bounds = array<i64: 32, 128>}, {pipeline_mode = #tpu.pipeline_mode<synchronous>, transform_indices = @transform_2, window_bounds = array<i64: 1, 128>}, {pipeline_mode = #tpu.pipeline_mode<synchronous>, transform_indices = @transform_3, window_bounds = array<i64: 1, 128>}, {pipeline_mode = #tpu.pipeline_mode<synchronous>, transform_indices = @transform_4, window_bounds = array<i64: 1, 128>}, {pipeline_mode = #tpu.pipeline_mode<synchronous>, transform_indices = @transform_5, window_bounds = array<i64: 1, 128>}, {transform_indices = @transform_6, window_bounds = array<i64: 16, 128>}]} {
    %c0 = arith.constant 0 : index
    %c0_0 = arith.constant 0 : index
    %0 = vector.load %arg1[%c0, %c0_0] : memref<16x32xf32, #tpu.memory_space<vmem>>, vector<16x32xf32>
    %c0_1 = arith.constant 0 : index
    %c0_2 = arith.constant 0 : index
    %1 = vector.load %arg2[%c0_1, %c0_2] : memref<32x128xf32, #tpu.memory_space<vmem>>, vector<32x128xf32>
    %cst = arith.constant dense<0.000000e+00> : vector<16x128xf32>
    %2 = tpu.matmul %0, %1, %cst {dimension_numbers = #tpu.dot_dimension_numbers<[1], [0], [0], [1], [0, 0, 1, 1], [], []>} : vector<16x32xf32>, vector<32x128xf32>, vector<16x128xf32> -> vector<16x128xf32>
    %c0_3 = arith.constant 0 : index
    %c0_4 = arith.constant 0 : index
    %3 = vector.load %arg3[%c0_3, %c0_4] : memref<1x128xf32, #tpu.memory_space<vmem>>, vector<1x128xf32>
    %4 = vector.broadcast %3 : vector<1x128xf32> to vector<16x128xf32>
    %5 = arith.addf %2, %4 : vector<16x128xf32>
    %cst_5 = arith.constant dense<0.000000e+00> : vector<16xf32>
    %6 = vector.multi_reduction <add>, %5, %cst_5 [1] : vector<16x128xf32> to vector<16xf32>
    %7 = vector.shape_cast %6 : vector<16xf32> to vector<16x1xf32>
    %cst_6 = arith.constant 1.562500e-02 : f32
    %8 = vector.broadcast %cst_6 : f32 to vector<16x1xf32>
    %9 = arith.mulf %7, %8 : vector<16x1xf32>
    %10 = vector.broadcast %9 : vector<16x1xf32> to vector<16x128xf32>
    %11 = arith.subf %5, %10 : vector<16x128xf32>
    %c0_7 = arith.constant 0 : index
    %c0_8 = arith.constant 0 : index
    %12 = vector.load %arg6[%c0_7, %c0_8] : memref<1x128xf32, #tpu.memory_space<vmem>>, vector<1x128xf32>
    %13 = vector.broadcast %12 : vector<1x128xf32> to vector<16x128xf32>
    %14 = arith.mulf %11, %13 : vector<16x128xf32>
    %15 = arith.mulf %14, %14 : vector<16x128xf32>
    %cst_9 = arith.constant dense<0.000000e+00> : vector<16xf32>
    %16 = vector.multi_reduction <add>, %15, %cst_9 [1] : vector<16x128xf32> to vector<16xf32>
    %17 = vector.shape_cast %16 : vector<16xf32> to vector<16x1xf32>
    %cst_10 = arith.constant 1.562500e-02 : f32
    %18 = vector.broadcast %cst_10 : f32 to vector<16x1xf32>
    %19 = arith.mulf %17, %18 : vector<16x1xf32>
    %cst_11 = arith.constant 9.99999996E-13 : f32
    %20 = vector.broadcast %cst_11 : f32 to vector<16x1xf32>
    %21 = arith.addf %19, %20 : vector<16x1xf32>
    %22 = math.rsqrt %21 : vector<16x1xf32>
    %23 = vector.broadcast %22 : vector<16x1xf32> to vector<16x128xf32>
    %24 = arith.mulf %14, %23 : vector<16x128xf32>
    %c0_12 = arith.constant 0 : index
    %c0_13 = arith.constant 0 : index
    %25 = vector.load %arg4[%c0_12, %c0_13] : memref<1x128xf32, #tpu.memory_space<vmem>>, vector<1x128xf32>
    %26 = vector.broadcast %25 : vector<1x128xf32> to vector<16x128xf32>
    %27 = arith.mulf %24, %26 : vector<16x128xf32>
    %c0_14 = arith.constant 0 : index
    %c0_15 = arith.constant 0 : index
    %28 = vector.load %arg5[%c0_14, %c0_15] : memref<1x128xf32, #tpu.memory_space<vmem>>, vector<1x128xf32>
    %29 = vector.broadcast %28 : vector<1x128xf32> to vector<16x128xf32>
    %30 = arith.addf %27, %29 : vector<16x128xf32>
    %c0_16 = arith.constant 0 : index
    %c0_17 = arith.constant 0 : index
    %31 = vector.load %arg7[%c0_16, %c0_17] : memref<16x128xf32, #tpu.memory_space<vmem>>, vector<16x128xf32>
    tpu.vector_store %arg7[%c0_16, %c0_17], %30 {strides = array<i32>} : memref<16x128xf32, #tpu.memory_space<vmem>>, vector<16x128xf32>,
    return
  }
  func.func @transform_0(%arg0: i32) -> (i32, i32) {
    %c0_i32 = arith.constant 0 : i32
    %c0_i32_0 = arith.constant 0 : i32
    return %arg0, %c0_i32 : i32, i32
  }
  func.func @transform_1(%arg0: i32) -> (i32, i32) {
    %c0_i32 = arith.constant 0 : i32
    %c0_i32_0 = arith.constant 0 : i32
    %c0_i32_1 = arith.constant 0 : i32
    return %c0_i32, %c0_i32_0 : i32, i32
  }
  func.func @transform_2(%arg0: i32) -> (i32, i32) {
    %c0_i32 = arith.constant 0 : i32
    %c0_i32_0 = arith.constant 0 : i32
    %c0_i32_1 = arith.constant 0 : i32
    return %c0_i32, %c0_i32_0 : i32, i32
  }
  func.func @transform_3(%arg0: i32) -> (i32, i32) {
    %c0_i32 = arith.constant 0 : i32
    %c0_i32_0 = arith.constant 0 : i32
    %c0_i32_1 = arith.constant 0 : i32
    return %c0_i32, %c0_i32_0 : i32, i32
  }
  func.func @transform_4(%arg0: i32) -> (i32, i32) {
    %c0_i32 = arith.constant 0 : i32
    %c0_i32_0 = arith.constant 0 : i32
    %c0_i32_1 = arith.constant 0 : i32
    return %c0_i32, %c0_i32_0 : i32, i32
  }
  func.func @transform_5(%arg0: i32) -> (i32, i32) {
    %c0_i32 = arith.constant 0 : i32
    %c0_i32_0 = arith.constant 0 : i32
    %c0_i32_1 = arith.constant 0 : i32
    return %c0_i32, %c0_i32_0 : i32, i32
  }
  func.func @transform_6(%arg0: i32) -> (i32, i32) {
    %c0_i32 = arith.constant 0 : i32
    %c0_i32_0 = arith.constant 0 : i32
    return %arg0, %c0_i32 : i32, i32
  }
}

</mosaic_0001>

<bundles_post_ra>
// kernel: tpu_custom_call.1
= control target key start
LH: loop header
LB: loop body
LE: loop exit
PB: predicated region body
PF: predicated region fallthrough
CT: control target
= control target key end

     0   :  { %11 = vsyncpa [#allocation3], 0  ;;  %s425_s0 = inlined_call_operand.hbm [shape: f32[16,32], index: 0, kind: input, shape index: {}]   ;;  %s426_s1 = inlined_call_operand.hbm [shape: f32[32,128], index: 1, kind: input, shape index: {}]   ;;  %s427_s2 = inlined_call_operand.vmem [shape: f32[1,128], index: 2, kind: input, shape index: {}]   ;;  %s428_s3 = inlined_call_operand.vmem [shape: f32[1,128], index: 3, kind: input, shape index: {}]   ;;  %s429_s4 = inlined_call_operand.vmem [shape: f32[1,128], index: 4, kind: input, shape index: {}]   ;;  %s430_s5 = inlined_call_operand.vmem [shape: f32[1,128], index: 5, kind: input, shape index: {}]   ;;  %s431_s6 = inlined_call_operand.hbm [shape: f32[16,128], index: 6, kind: output, shape index: {}]  }
   0x1   :  { %12 = vsyncpa [#allocation6], 0 }
   0x2   :  { %13 = vsyncpa [#allocation4], 0  ;;  %s328_s21 = smov [#allocation2]   ;;  %s256_s25 = scalar_lea.hbm %s425_s0, 256 }
   0x3   :  { %s19_s22 = sshll.u32 %s328_s21, 4  ;;  %p257_p0 = scmp.ne.s32.totalorder %s425_s0, %s256_s25  ;;  %s20_s22 = int_to_ptr.vmem [resolvable:$true] %s19_s22 }
   0x4   :  { %p260_p1 = scmp.lt.u32.totalorder %s256_s25, %s425_s0 }
   0x6   :  { %p262_p2 = pnand %p260_p1, %p257_p0 }
   0x8   :  { %265 = shalt.err (!%p262_p2)
}
   0x9   :  { %s266_s30 = scalar_lea.vmem %s20_s22, 256  ;;  %p271_p4 = scmp.lt.s32.totalorder %s20_s22, %s20_s22 }
   0xa   :  { %p267_p3 = scmp.ne.s32.totalorder %s20_s22, %s266_s30  ;;  %p272_p5 = scmp.lt.s32.totalorder %s266_s30, %s266_s30 }
   0xc   :  { %p273_p6 = por %p272_p5, %p271_p4 }
   0xe   :  { %p274_p7 = pnand %p273_p6, %p267_p3 }
  0x10   :  { %277 = shalt.err (!%p274_p7)
}
  0x11   :  { %s329_s7 = smov 128   ;;  %s330_s8 = smov 8  }
  0x12   :  { %25 = dma.hbm_to_vmem [thread:$0]  %s425_s0, 256, %s20_s22, [#allocation3], %s329_s7, %s329_s7, %s330_s8  }
  0x13   :  { %s331_s11 = smov [#allocation5]   ;;  %s278_s15 = scalar_lea.hbm %s426_s1, 512 }
  0x14   :  { %s31_s12 = sshll.u32 %s331_s11, 4  ;;  %p279_p8 = scmp.ne.s32.totalorder %s426_s1, %s278_s15  ;;  %s32_s12 = int_to_ptr.vmem [resolvable:$true] %s31_s12 }
  0x15   :  { %p282_p9 = scmp.lt.u32.totalorder %s278_s15, %s426_s1 }
  0x17   :  { %p284_p10 = pnand %p282_p9, %p279_p8 }
  0x19   :  { %287 = shalt.err (!%p284_p10)
}
  0x1a   :  { %s288_s20 = scalar_lea.vmem %s32_s12, 512  ;;  %p293_p12 = scmp.lt.s32.totalorder %s32_s12, %s32_s12 }
  0x1b   :  { %p289_p11 = scmp.ne.s32.totalorder %s32_s12, %s288_s20  ;;  %p294_p13 = scmp.lt.s32.totalorder %s288_s20, %s288_s20 }
  0x1d   :  { %p295_p0 = por %p294_p13, %p293_p12 }
  0x1f   :  { %p296_p1 = pnand %p295_p0, %p289_p11 }
  0x21   :  { %299 = shalt.err (!%p296_p1)
}
  0x22   :  { %37 = dma.hbm_to_vmem [thread:$0]  %s426_s1, 512, %s32_s12, [#allocation6], %s329_s7, %s329_s7, %s330_s8  }
  0x23   :  { %322 = dma.done.wait [#allocation3], 256  }
  0x24   :  { %323 = vsyncadd [#allocation3], 4294967040 }
  0x25   :  { %324 = dma.done.wait [#allocation6], 512  }
  0x26   :  { %325 = vsyncadd [#allocation6], 4294966784  ;;  %vm65_vm0 = vcmask 261120   ;;  %v54_v0 = vld [vmem:[#allocation5] sm:$0xff]  ;;  %v55_v1 = vld [vmem:[#allocation5 + $0x8] sm:$0xff]  ;;  %s332_s27 = smov [#allocation7]  }
  0x27   :  { %v56_v2 = vld [vmem:[#allocation5 + $0x10] sm:$0xff]  ;;  %v239_v3 = vpack.c.bf16 %v55_v1, %v54_v0  ;;  %v57_v4 = vld [vmem:[#allocation5 + $0x18] sm:$0xff]  ;;  %s203_s28 = sshll.u32 %s332_s27, 4  ;;  %s204_s28 = int_to_ptr.vmem [resolvable:$true] %s203_s28 }
  0x28   :  { %v52_v5 = vld [vmem:[#allocation2] sm:$0xff]  ;;  %v243_v6 = vpack.c.bf16 %v57_v4, %v56_v2  ;;  %v53_v7 = vld [vmem:[#allocation2 + $0x8] sm:$0xff]  ;;  %s300_s29 = scalar_lea.vmem %s204_s28, 256  ;;  %p305_p3 = scmp.lt.s32.totalorder %s204_s28, %s204_s28 }
  0x29   :  { %236 = vmatprep.mubr.msk.f32.mxu0 %vm65_vm0, %v52_v5  ;;  %240 = vmatprep.subr.bf16.mxu0 %v239_v3  ;;  %v216_v8 = vld [vmem:[%s427_s2] ss:$0 sm:$0xff]  ;;  %p301_p2 = scmp.ne.s32.totalorder %s204_s28, %s300_s29  ;;  %p306_p4 = scmp.lt.s32.totalorder %s300_s29, %s300_s29 }
  0x2a   :  { %242 = vmatpush3.bf16.msra.mxu0 %v239_v3  ;;  %v219_v15 = vld [vmem:[%s430_s5] ss:$0 sm:$0xff] }
  0x2b   :  { %244 = vmatprep.subr.bf16.mxu0 %v243_v6  ;;  %v220_v31 = vld [vmem:[%s428_s3] ss:$0 sm:$0xff]  ;;  %p307_p5 = por %p306_p4, %p305_p3 }
  0x2c   :  { %v221_v33 = vld [vmem:[%s429_s4] ss:$0 sm:$0xff] }
  0x2d   :  { %p308_p6 = pnand %p307_p5, %p301_p2 }
  0x2e   :  { %246 = vmatpush3.bf16.msra.mxu0 %v243_v6 }
  0x31   :  { %237 = vmatmul.mubr.msk.f32.vlgmr.msra.gmra.mrb[0].mxu0 %vm65_vm0, %v53_v7 }
 0x104   :  { %v238_v9 = vpop.f32.mrb[0].mxu0 }
 0x105   :  { %v138_v10 = vpop.f32.mrb[1].mxu0  ;;  %v144_v12 = vadd.f32 %v238_v9, %v216_v8 }
 0x106   :  { %v139_v11 = vadd.f32 %v216_v8, %v138_v10 }
 0x108   :  { %147 = vadd.xlane.f32.xlu0 %v139_v11 }
 0x10c   :  { %149 = vadd.xlane.f32.xlu0 %v144_v12 }
 0x195   :  { %v148_v13 = vpop.xlane.xlu0 %147 }
 0x196   :  { %v151_v14 = vmul.f32 0.015625, %v148_v13 }
 0x198   :  { %v153_v16 = vsub.f32 %v139_v11, %v151_v14 }
 0x199   :  { %v150_v17 = vpop.xlane.xlu0 %149 }
 0x19a   :  { %v152_v18 = vmul.f32 0.015625, %v150_v17  ;;  %v162_v19 = vmul.f32 %v219_v15, %v153_v16 }
 0x19c   :  { %v154_v20 = vsub.f32 %v144_v12, %v152_v18  ;;  %v164_v21 = vmul.f32 %v162_v19, %v162_v19 }
 0x19e   :  { %166 = vadd.xlane.f32.xlu1 %v164_v21  ;;  %v163_v22 = vmul.f32 %v219_v15, %v154_v20 }
 0x1a0   :  { %v165_v23 = vmul.f32 %v163_v22, %v163_v22 }
 0x1a2   :  { %168 = vadd.xlane.f32.xlu1 %v165_v23 }
 0x22b   :  { %v167_v24 = vpop.xlane.xlu1 %166 }
 0x22c   :  { %v170_v25 = vmul.f32 0.015625, %v167_v24 }
 0x22e   :  { %v172_v26 = vadd.f32 1e-12, %v170_v25 }
 0x22f   :  { %v169_v27 = vpop.xlane.xlu1 %168 }
 0x230   :  { %252 = vrsqrt.f32 %v172_v26  ;;  %v171_v28 = vmul.f32 0.015625, %v169_v27 }
 0x232   :  { %v173_v29 = vadd.f32 1e-12, %v171_v28 }
 0x234   :  { %254 = vrsqrt.f32 %v173_v29 }
 0x23a   :  { %v253_v30 = vpop.eup %252 }
 0x23b   :  { %v176_v32 = vmul.f32 %v253_v30, %v162_v19 }
 0x23d   :  { %v185_v34 = vmul.f32 %v220_v31, %v176_v32 }
 0x23e   :  { %v255_v35 = vpop.eup %254 }
 0x23f   :  { %v177_v36 = vmul.f32 %v255_v35, %v163_v22  ;;  %v194_v37 = vadd.f32 %v221_v33, %v185_v34 }
 0x241   :  { %v186_v38 = vmul.f32 %v220_v31, %v177_v36  ;;  %196 = vst [vmem:[#allocation7] sm:$0xff] %v194_v37 }
 0x243   :  { %v195_v39 = vadd.f32 %v221_v33, %v186_v38 }
 0x245   :  { %197 = vst [vmem:[#allocation7 + $0x8] sm:$0xff] %v195_v39 }
 0x246   :  { %311 = shalt.err (!%p308_p6)
}
 0x247   :  { %s312_s30 = scalar_lea.hbm %s431_s6, 256 }
 0x248   :  { %p313_p7 = scmp.ne.s32.totalorder %s431_s6, %s312_s30  ;;  %p316_p8 = scmp.lt.u32.totalorder %s312_s30, %s431_s6 }
 0x24a   :  { %p318_p9 = pnand %p316_p8, %p313_p7 }
 0x24c   :  { %321 = shalt.err (!%p318_p9)
}
 0x24d   :  { %209 = dma.vmem_to_hbm [thread:$0]  %s204_s28, 256, %s431_s6, [#allocation4], %s329_s7, %s329_s7, %s330_s8  }
 0x24e   :  { %326 = dma.done.wait [#allocation4], 256  }
 0x24f   :  { %327 = vsyncadd [#allocation4], 4294967040 }
 0x250   :  { %213 = vsyncpa [#allocation3], 1 }
 0x251   :  { %214 = vsyncpa [#allocation6], 1 }
 0x252   :  { %215 = vsyncpa [#allocation4], 1 }

// kernel: tpu_custom_call.1
= control target key start
LH: loop header
LB: loop body
LE: loop exit
PB: predicated region body
PF: predicated region fallthrough
CT: control target
= control target key end

     0   :  { %11 = vsyncpa [#allocation3], 0  ;;  %s425_s0 = inlined_call_operand.hbm [shape: f32[16,32], index: 0, kind: input, shape index: {}]   ;;  %s426_s1 = inlined_call_operand.hbm [shape: f32[32,128], index: 1, kind: input, shape index: {}]   ;;  %s427_s2 = inlined_call_operand.vmem [shape: f32[1,128], index: 2, kind: input, shape index: {}]   ;;  %s428_s3 = inlined_call_operand.vmem [shape: f32[1,128], index: 3, kind: input, shape index: {}]   ;;  %s429_s4 = inlined_call_operand.vmem [shape: f32[1,128], index: 4, kind: input, shape index: {}]   ;;  %s430_s5 = inlined_call_operand.vmem [shape: f32[1,128], index: 5, kind: input, shape index: {}]   ;;  %s431_s6 = inlined_call_operand.hbm [shape: f32[16,128], index: 6, kind: output, shape index: {}]  }
   0x1   :  { %12 = vsyncpa [#allocation6], 0 }
   0x2   :  { %13 = vsyncpa [#allocation4], 0  ;;  %s328_s21 = smov [#allocation2]   ;;  %s256_s25 = scalar_lea.hbm %s425_s0, 256 }
   0x3   :  { %s19_s22 = sshll.u32 %s328_s21, 4  ;;  %p257_p0 = scmp.ne.s32.totalorder %s425_s0, %s256_s25  ;;  %s20_s22 = int_to_ptr.vmem [resolvable:$true] %s19_s22 }
   0x4   :  { %p260_p1 = scmp.lt.u32.totalorder %s256_s25, %s425_s0 }
   0x6   :  { %p262_p2 = pnand %p260_p1, %p257_p0 }
   0x8   :  { %265 = shalt.err (!%p262_p2)
}
   0x9   :  { %s266_s30 = scalar_lea.vmem %s20_s22, 256  ;;  %p271_p4 = scmp.lt.s32.totalorder %s20_s22, %s20_s22 }
   0xa   :  { %p267_p3 = scmp.ne.s32.totalorder %s20_s22, %s266_s30  ;;  %p272_p5 = scmp.lt.s32.totalorder %s266_s30, %s266_s30 }
   0xc   :  { %p273_p6 = por %p272_p5, %p271_p4 }
   0xe   :  { %p274_p7 = pnand %p273_p6, %p267_p3 }
  0x10   :  { %277 = shalt.err (!%p274_p7)
}
  0x11   :  { %s329_s7 = smov 128   ;;  %s330_s8 = smov 8  }
  0x12   :  { %25 = dma.hbm_to_vmem [thread:$0]  %s425_s0, 256, %s20_s22, [#allocation3], %s329_s7, %s329_s7, %s330_s8  }
  0x13   :  { %s331_s11 = smov [#allocation5]   ;;  %s278_s15 = scalar_lea.hbm %s426_s1, 512 }
  0x14   :  { %s31_s12 = sshll.u32 %s331_s11, 4  ;;  %p279_p8 = scmp.ne.s32.totalorder %s426_s1, %s278_s15  ;;  %s32_s12 = int_to_ptr.vmem [resolvable:$true] %s31_s12 }
  0x15   :  { %p282_p9 = scmp.lt.u32.totalorder %s278_s15, %s426_s1 }
  0x17   :  { %p284_p10 = pnand %p282_p9, %p279_p8 }
  0x19   :  { %287 = shalt.err (!%p284_p10)
}
  0x1a   :  { %s288_s20 = scalar_lea.vmem %s32_s12, 512  ;;  %p293_p12 = scmp.lt.s32.totalorder %s32_s12, %s32_s12 }
  0x1b   :  { %p289_p11 = scmp.ne.s32.totalorder %s32_s12, %s288_s20  ;;  %p294_p13 = scmp.lt.s32.totalorder %s288_s20, %s288_s20 }
  0x1d   :  { %p295_p0 = por %p294_p13, %p293_p12 }
  0x1f   :  { %p296_p1 = pnand %p295_p0, %p289_p11 }
  0x21   :  { %299 = shalt.err (!%p296_p1)
}
  0x22   :  { %37 = dma.hbm_to_vmem [thread:$0]  %s426_s1, 512, %s32_s12, [#allocation6], %s329_s7, %s329_s7, %s330_s8  }
  0x23   :  { %322 = dma.done.wait [#allocation3], 256  }
  0x24   :  { %323 = vsyncadd [#allocation3], 4294967040 }
  0x25   :  { %324 = dma.done.wait [#allocation6], 512  }
  0x26   :  { %325 = vsyncadd [#allocation6], 4294966784  ;;  %vm65_vm0 = vcmask 261120   ;;  %v54_v0 = vld [vmem:[#allocation5] sm:$0xff]  ;;  %v55_v1 = vld [vmem:[#allocation5 + $0x8] sm:$0xff]  ;;  %s332_s27 = smov [#allocation7]  }
  0x27   :  { %v56_v2 = vld [vmem:[#allocation5 + $0x10] sm:$0xff]  ;;  %v239_v3 = vpack.c.bf16 %v55_v1, %v54_v0  ;;  %v57_v4 = vld [vmem:[#allocation5 + $0x18] sm:$0xff]  ;;  %s203_s28 = sshll.u32 %s332_s27, 4  ;;  %s204_s28 = int_to_ptr.vmem [resolvable:$true] %s203_s28 }
  0x28   :  { %v52_v5 = vld [vmem:[#allocation2] sm:$0xff]  ;;  %v243_v6 = vpack.c.bf16 %v57_v4, %v56_v2  ;;  %v53_v7 = vld [vmem:[#allocation2 + $0x8] sm:$0xff]  ;;  %s300_s29 = scalar_lea.vmem %s204_s28, 256  ;;  %p305_p3 = scmp.lt.s32.totalorder %s204_s28, %s204_s28 }
  0x29   :  { %236 = vmatprep.mubr.msk.f32.mxu0 %vm65_vm0, %v52_v5  ;;  %240 = vmatprep.subr.bf16.mxu0 %v239_v3  ;;  %v216_v8 = vld [vmem:[%s427_s2] ss:$0 sm:$0xff]  ;;  %p301_p2 = scmp.ne.s32.totalorder %s204_s28, %s300_s29  ;;  %p306_p4 = scmp.lt.s32.totalorder %s300_s29, %s300_s29 }
  0x2a   :  { %242 = vmatpush3.bf16.msra.mxu0 %v239_v3  ;;  %v219_v15 = vld [vmem:[%s430_s5] ss:$0 sm:$0xff] }
  0x2b   :  { %244 = vmatprep.subr.bf16.mxu0 %v243_v6  ;;  %v220_v31 = vld [vmem:[%s428_s3] ss:$0 sm:$0xff]  ;;  %p307_p5 = por %p306_p4, %p305_p3 }
  0x2c   :  { %v221_v33 = vld [vmem:[%s429_s4] ss:$0 sm:$0xff] }
  0x2d   :  { %p308_p6 = pnand %p307_p5, %p301_p2 }
  0x2e   :  { %246 = vmatpush3.bf16.msra.mxu0 %v243_v6 }
  0x31   :  { %237 = vmatmul.mubr.msk.f32.vlgmr.msra.gmra.mrb[0].mxu0 %vm65_vm0, %v53_v7 }
 0x104   :  { %v238_v9 = vpop.f32.mrb[0].mxu0 }
 0x105   :  { %v138_v10 = vpop.f32.mrb[1].mxu0  ;;  %v144_v12 = vadd.f32 %v238_v9, %v216_v8 }
 0x106   :  { %v139_v11 = vadd.f32 %v216_v8, %v138_v10 }
 0x108   :  { %147 = vadd.xlane.f32.xlu0 %v139_v11 }
 0x10c   :  { %149 = vadd.xlane.f32.xlu0 %v144_v12 }
 0x195   :  { %v148_v13 = vpop.xlane.xlu0 %147 }
 0x196   :  { %v151_v14 = vmul.f32 0.015625, %v148_v13 }
 0x198   :  { %v153_v16 = vsub.f32 %v139_v11, %v151_v14 }
 0x199   :  { %v150_v17 = vpop.xlane.xlu0 %149 }
 0x19a   :  { %v152_v18 = vmul.f32 0.015625, %v150_v17  ;;  %v162_v19 = vmul.f32 %v219_v15, %v153_v16 }
 0x19c   :  { %v154_v20 = vsub.f32 %v144_v12, %v152_v18  ;;  %v164_v21 = vmul.f32 %v162_v19, %v162_v19 }
 0x19e   :  { %166 = vadd.xlane.f32.xlu1 %v164_v21  ;;  %v163_v22 = vmul.f32 %v219_v15, %v154_v20 }
 0x1a0   :  { %v165_v23 = vmul.f32 %v163_v22, %v163_v22 }
 0x1a2   :  { %168 = vadd.xlane.f32.xlu1 %v165_v23 }
 0x22b   :  { %v167_v24 = vpop.xlane.xlu1 %166 }
 0x22c   :  { %v170_v25 = vmul.f32 0.015625, %v167_v24 }
 0x22e   :  { %v172_v26 = vadd.f32 1e-12, %v170_v25 }
 0x22f   :  { %v169_v27 = vpop.xlane.xlu1 %168 }
 0x230   :  { %252 = vrsqrt.f32 %v172_v26  ;;  %v171_v28 = vmul.f32 0.015625, %v169_v27 }
 0x232   :  { %v173_v29 = vadd.f32 1e-12, %v171_v28 }
 0x234   :  { %254 = vrsqrt.f32 %v173_v29 }
 0x23a   :  { %v253_v30 = vpop.eup %252 }
 0x23b   :  { %v176_v32 = vmul.f32 %v253_v30, %v162_v19 }
 0x23d   :  { %v185_v34 = vmul.f32 %v220_v31, %v176_v32 }
 0x23e   :  { %v255_v35 = vpop.eup %254 }
 0x23f   :  { %v177_v36 = vmul.f32 %v255_v35, %v163_v22  ;;  %v194_v37 = vadd.f32 %v221_v33, %v185_v34 }
 0x241   :  { %v186_v38 = vmul.f32 %v220_v31, %v177_v36  ;;  %196 = vst [vmem:[#allocation7] sm:$0xff] %v194_v37 }
 0x243   :  { %v195_v39 = vadd.f32 %v221_v33, %v186_v38 }
 0x245   :  { %197 = vst [vmem:[#allocation7 + $0x8] sm:$0xff] %v195_v39 }
 0x246   :  { %311 = shalt.err (!%p308_p6)
}
 0x247   :  { %s312_s30 = scalar_lea.hbm %s431_s6, 256 }
 0x248   :  { %p313_p7 = scmp.ne.s32.totalorder %s431_s6, %s312_s30  ;;  %p316_p8 = scmp.lt.u32.totalorder %s312_s30, %s431_s6 }
 0x24a   :  { %p318_p9 = pnand %p316_p8, %p313_p7 }
 0x24c   :  { %321 = shalt.err (!%p318_p9)
}
 0x24d   :  { %209 = dma.vmem_to_hbm [thread:$0]  %s204_s28, 256, %s431_s6, [#allocation4], %s329_s7, %s329_s7, %s330_s8  }
 0x24e   :  { %326 = dma.done.wait [#allocation4], 256  }
 0x24f   :  { %327 = vsyncadd [#allocation4], 4294967040 }
 0x250   :  { %213 = vsyncpa [#allocation3], 1 }
 0x251   :  { %214 = vsyncpa [#allocation6], 1 }
 0x252   :  { %215 = vsyncpa [#allocation4], 1 }

</bundles_post_ra>
